<compile_context>
chip_gen: v6e
topology: v6e:2x2x1
jax: 0.10.0
libtpu: 0.0.40
codegen_flags: <defaults>
</compile_context>

<pallas_src>
import functools

import jax
import jax.numpy as jnp
from jax.experimental import pallas as pl
from jax.experimental.pallas import tpu as pltpu

GEM_EPS = 1e-6     # GeM clamp eps
BN_EPS = 1e-5      # nn.BatchNorm1d default eps
NORM_EPS = 1e-12   # F.normalize default eps


# --------------------------------------------------------------------------------------
# Tiling / VMEM helpers
# --------------------------------------------------------------------------------------
def _largest_tile(total, align, cap):
    """Largest multiple of `align` dividing `total` and <= cap; falls back to `total`."""
    if total <= cap:
        return total
    t = (cap // align) * align
    while t >= align:
        if total % t == 0:
            return t
        t -= align
    return total


def _pick_hw_tile(B, HW, c_tile, itemsize=4, target_bytes=1 << 20):
    """Spatial tile sized so each streamed x block is ~target_bytes (or full HW if small)."""
    if B * HW * c_tile * itemsize <= 2 * target_bytes:
        return HW
    rows = max(8, (target_bytes // (B * c_tile * itemsize)) // 8 * 8)
    return _largest_tile(HW, 8, rows)


def _vmem_limit(buffer_bytes, floor=8 << 20, headroom=4 << 20, cap=48 << 20):
    """Size the scoped-VMEM request from actual buffer need; never ask for v7x's full 64MiB."""
    return int(min(cap, max(floor, buffer_bytes + headroom)))


# --------------------------------------------------------------------------------------
# Pass 1: GeM pooling — grid (C blocks [parallel], HW blocks [arbitrary/reduction])
# --------------------------------------------------------------------------------------
def gem_pool_kernel(p_ref, x_ref, feat_ref, *, inv_hw, static_p_int):
    k = pl.program_id(1)

    @pl.when(k == 0)
    def _():
        feat_ref[...] = jnp.zeros_like(feat_ref)

    xc = jnp.maximum(x_ref[...], GEM_EPS)            # (B, hw_tile, c_tile), C on lanes
    if static_p_int is not None:
        xp = xc
        for _ in range(static_p_int - 1):            # VPU multiply chain, no EUP
            xp = xp * xc
    else:
        p = p_ref[0, 0]
        xp = jnp.exp(p * jnp.log(xc))                # trainable-p path (EUP)
    feat_ref[...] += jnp.sum(xp, axis=1)             # accumulate in resident out block

    @pl.when(k == pl.num_programs(1) - 1)
    def _():
        pooled = feat_ref[...] * inv_hw              # spatial mean, only (B, c_tile)
        if static_p_int is not None:
            inv_p = 1.0 / float(static_p_int)
        else:
            inv_p = 1.0 / p_ref[0, 0]
        feat_ref[...] = jnp.exp(jnp.log(pooled) * inv_p)   # pooled ** (1/p)


# --------------------------------------------------------------------------------------
# Pass 2: folded neck (Linear+BN eval) + PReLU + L2-normalize  (single shot, tiny)
# --------------------------------------------------------------------------------------
def neck_kernel(alpha_ref, feat_ref, w_ref, b_ref, hn_ref):
    h = jnp.dot(feat_ref[...], w_ref[...], preferred_element_type=jnp.float32) + b_ref[...]
    alpha = alpha_ref[0, 0]
    h = jnp.where(h >= 0.0, h, alpha * h)                      # PReLU
    nrm = jnp.sqrt(jnp.sum(h * h, axis=-1, keepdims=True))
    hn_ref[...] = (h / jnp.maximum(nrm, NORM_EPS)).astype(hn_ref.dtype)


# --------------------------------------------------------------------------------------
# Pass 3: ArcMargin head — stream pre-normalized (E, CLS) weight over wide class blocks
# --------------------------------------------------------------------------------------
def head_kernel(hn_ref, w_ref, out_ref):
    out_ref[...] = jnp.dot(hn_ref[...], w_ref[...], preferred_element_type=jnp.float32)


# --------------------------------------------------------------------------------------
# Forward
# --------------------------------------------------------------------------------------
def model_forward(x_feat_nhwc, params, *, hw_tile=None, c_tile=None, cls_tile=None,
                  static_p_int=None, head_dtype=jnp.bfloat16):
    """x_feat_nhwc: (B, H, W, C) float32 backbone feature map (channels-last, lane-dense).

    static_p_int: if given, GeM uses this integer exponent via VPU multiplies (must equal
                  params['p']; recommended — the exp/log path is EUP-bound on v7x/v5e).
    head_dtype:   dtype of h_norm / head-weight stream (bf16 halves head HBM traffic;
                  the MXU accumulate stays f32).
    """
    B, H, W, C = x_feat_nhwc.shape
    HW = H * W
    x = x_feat_nhwc.reshape(B, HW, C)                # free reshape, channels already last

    # Host-side fold of BN(eval) into the neck Linear (zero accuracy change).
    scale = params['gamma'] * jax.lax.rsqrt(params['rvar'] + BN_EPS)       # (1, E)
    w_neck = params['w1'] * scale                                          # (C, E)
    b_neck = (params['b1'] - params['rmean']) * scale + params['beta']     # (1, E)

    # Host-side pre-normalization of the (constant) ArcMargin weight, laid out (E, CLS).
    w_head = params['head_w']                                              # (CLS, E)
    w_head = w_head / jnp.maximum(
        jnp.sqrt(jnp.sum(w_head * w_head, axis=-1, keepdims=True)), NORM_EPS)
    w_head = w_head.T.astype(head_dtype)                                   # (E, CLS)

    E = w_neck.shape[1]
    CLS = w_head.shape[1]
    hd_bytes = jnp.dtype(head_dtype).itemsize

    # Tile selection.
    c_tile = c_tile or _largest_tile(C, 128, 2048)
    hw_tile = hw_tile or _pick_hw_tile(B, HW, c_tile)
    cls_tile = cls_tile or _largest_tile(CLS, 128, min(4096, max(CLS // 2, 128)))
    assert C % c_tile == 0 and HW % hw_tile == 0 and CLS % cls_tile == 0

    smem_scalar = pl.BlockSpec((1, 1), lambda *_: (0, 0),
                               memory_space=pltpu.MemorySpace.SMEM)

    # ---- pass 1: GeM pooling ----
    gem_cost = pl.CostEstimate(
        flops=int(2 * B * HW * C),
        transcendentals=int((0 if static_p_int is not None else 2 * B * HW * C) + 2 * B * C),
        bytes_accessed=int(4 * (B * HW * C + B * C)),
    )
    vmem1 = _vmem_limit(2 * B * hw_tile * c_tile * 4 + 2 * B * c_tile * 4)
    feat = pl.pallas_call(
        functools.partial(gem_pool_kernel, inv_hw=1.0 / HW, static_p_int=static_p_int),
        out_shape=jax.ShapeDtypeStruct((B, C), jnp.float32),
        grid=(C // c_tile, HW // hw_tile),
        in_specs=[
            smem_scalar,                                                   # GeM p
            pl.BlockSpec((B, hw_tile, c_tile), lambda ci, k: (0, k, ci)),  # streamed x tiles
        ],
        out_specs=pl.BlockSpec((B, c_tile), lambda ci, k: (0, ci)),        # resident accumulator
        compiler_params=pltpu.CompilerParams(
            dimension_semantics=("parallel", "arbitrary"),
            vmem_limit_bytes=vmem1,
        ),
        cost_estimate=gem_cost,
    )(params['p'], x)

    # ---- pass 2: folded neck + PReLU + normalize (tiny) ----
    neck_cost = pl.CostEstimate(
        flops=int(2 * B * C * E + 8 * B * E),
        transcendentals=int(B),
        bytes_accessed=int(4 * (B * C + C * E + E) + hd_bytes * B * E),
    )
    vmem2 = _vmem_limit(2 * (B * C * 4 + C * E * 4 + E * 4 + B * E * hd_bytes))
    h_norm = pl.pallas_call(
        neck_kernel,
        out_shape=jax.ShapeDtypeStruct((B, E), head_dtype),
        grid=(1,),
        in_specs=[
            smem_scalar,                                   # PReLU alpha
            pl.BlockSpec((B, C), lambda i: (0, 0)),        # pooled features
            pl.BlockSpec((C, E), lambda i: (0, 0)),        # folded neck weight
            pl.BlockSpec((1, E), lambda i: (0, 0)),        # folded neck bias
        ],
        out_specs=pl.BlockSpec((B, E), lambda i: (0, 0)),
        compiler_params=pltpu.CompilerParams(
            dimension_semantics=("arbitrary",),
            vmem_limit_bytes=vmem2,
        ),
        cost_estimate=neck_cost,
    )(params['alpha'], feat, w_neck, b_neck)

    # ---- pass 3: ArcMargin head, parallel over wide class blocks ----
    head_cost = pl.CostEstimate(
        flops=int(2 * B * E * CLS),
        transcendentals=0,
        bytes_accessed=int(hd_bytes * (B * E + E * CLS) + 4 * B * CLS),
    )
    vmem3 = _vmem_limit(2 * (E * cls_tile * hd_bytes + B * cls_tile * 4 + B * E * hd_bytes))
    out = pl.pallas_call(
        head_kernel,
        out_shape=jax.ShapeDtypeStruct((B, CLS), jnp.float32),
        grid=(CLS // cls_tile,),
        in_specs=[
            pl.BlockSpec((B, E), lambda j: (0, 0)),           # resident h_norm (bf16)
            pl.BlockSpec((E, cls_tile), lambda j: (0, j)),    # streamed class block (bf16)
        ],
        out_specs=pl.BlockSpec((B, cls_tile), lambda j: (0, j)),
        compiler_params=pltpu.CompilerParams(
            dimension_semantics=("parallel",),
            vmem_limit_bytes=vmem3,
        ),
        cost_estimate=head_cost,
    )(h_norm, w_head)
    return out


def reference_forward(x_feat_nhwc, params):
    """Pure-JAX reference for verification (channels-last feature map)."""
    p = params['p'][0, 0]
    xc = jnp.maximum(x_feat_nhwc, GEM_EPS)
    feat = jnp.mean(xc ** p, axis=(1, 2)) ** (1.0 / p)                # (B, C)
    h = feat @ params['w1'] + params['b1']
    h = (h - params['rmean']) / jnp.sqrt(params['rvar'] + BN_EPS) * params['gamma'] + params['beta']
    alpha = params['alpha'][0, 0]
    h = jnp.where(h >= 0, h, alpha * h)
    h_n = h / jnp.maximum(jnp.linalg.norm(h, axis=-1, keepdims=True), NORM_EPS)
    w = params['head_w']
    w_n = w / jnp.maximum(jnp.linalg.norm(w, axis=-1, keepdims=True), NORM_EPS)
    return h_n @ w_n.T


if __name__ == "__main__":
    # Small shapes consistent with the forward pass (128-aligned where it matters):
    B, F_FEATS, H, W = 2, 256, 8, 8      # backbone output feature map (channels-last)
    EMBED, CLS = 128, 512

    key = jax.random.PRNGKey(0)
    k_x, k_w1, k_b1, k_wh = jax.random.split(key, 4)

    # Backbone-output stand-in (positive-ish activations, channels-last layout).
    x_feat = jax.random.uniform(k_x, (B, H, W, F_FEATS), jnp.float32, 0.0, 2.0)

    # Neck Linear (torch weight is (E, F); we pass it as (F, E)).
    bound1 = (6.0 / (F_FEATS + EMBED)) ** 0.5
    w1 = jax.random.uniform(k_w1, (F_FEATS, EMBED), jnp.float32, -bound1, bound1)
    b1 = jax.random.uniform(k_b1, (1, EMBED), jnp.float32, -0.1, 0.1)

    bound_h = (6.0 / (EMBED + CLS)) ** 0.5
    params = dict(
        p=jnp.full((1, 1), 3.0, jnp.float32),          # GeM trainable p
        alpha=jnp.full((1, 1), 0.25, jnp.float32),     # PReLU default slope
        w1=w1,
        b1=b1,
        gamma=jnp.ones((1, EMBED), jnp.float32),
        beta=jnp.zeros((1, EMBED), jnp.float32),
        rmean=jnp.zeros((1, EMBED), jnp.float32),
        rvar=jnp.ones((1, EMBED), jnp.float32),
        # ArcMargin weight, xavier-uniform style init, shape (cls_num, embed)
        head_w=jax.random.uniform(k_wh, (CLS, EMBED), jnp.float32, -bound_h, bound_h),
    )

    ref = reference_forward(x_feat, params)

    # Run 1: recommended config — auto tiles, static integer p (VPU path), bf16 head stream.
    out1 = jax.block_until_ready(model_forward(x_feat, params, static_p_int=3))
    assert out1.shape == (B, CLS)
    assert jnp.allclose(out1, ref, atol=1e-2, rtol=1e-2), "mismatch (static-p run)"

    # Run 2: explicit small tiles + trainable-p (EUP) path to exercise multi-step grids.
    out2 = jax.block_until_ready(
        model_forward(x_feat, params, hw_tile=16, c_tile=128, cls_tile=256,
                      static_p_int=None))
    assert jnp.allclose(out2, ref, atol=1e-2, rtol=1e-2), "mismatch (trainable-p run)"

    print("KERNEL_OK")
</pallas_src>

<mosaic_0001>
module attributes {stable_mosaic.version = 11 : i64} {
  func.func @gem_pool_kernel(%arg0: i32, %arg1: i32, %arg2: memref<1x1xf32, #tpu.memory_space<smem>>, %arg3: memref<2x64x256xf32, #tpu.memory_space<vmem>>, %arg4: memref<2x256xf32, #tpu.memory_space<vmem>>) attributes {dimension_semantics = [#tpu.dimension_semantics<parallel>, #tpu.dimension_semantics<arbitrary>], iteration_bounds = array<i64: 1, 1>, scalar_prefetch = 0 : i64, scratch_operands = 0 : i64, tpu.core_type = #tpu.core_type<tc>, window_params = [{transform_indices = @transform_0, window_bounds = array<i64: 1, 1>}, {transform_indices = @transform_1, window_bounds = array<i64: 2, 64, 256>}, {transform_indices = @transform_2, window_bounds = array<i64: 2, 256>}]} {
    %c0_i32 = arith.constant 0 : i32
    %0 = arith.cmpi eq, %arg1, %c0_i32 : i32
    %1 = arith.extui %0 : i1 to i32
    %c0_i32_0 = arith.constant 0 : i32
    %2 = arith.cmpi ne, %1, %c0_i32_0 : i32
    scf.if %2 {
      %cst_10 = arith.constant 0.000000e+00 : f32
      %15 = vector.broadcast %cst_10 : f32 to vector<2x256xf32>
      %c0_11 = arith.constant 0 : index
      %c0_12 = arith.constant 0 : index
      %16 = vector.load %arg4[%c0_11, %c0_12] : memref<2x256xf32, #tpu.memory_space<vmem>>, vector<2x256xf32>
      tpu.vector_store %arg4[%c0_11, %c0_12], %15 {strides = array<i32>} : memref<2x256xf32, #tpu.memory_space<vmem>>, vector<2x256xf32>,
    } else {
    }
    %c0 = arith.constant 0 : index
    %c0_1 = arith.constant 0 : index
    %c0_2 = arith.constant 0 : index
    %3 = vector.load %arg3[%c0, %c0_1, %c0_2] : memref<2x64x256xf32, #tpu.memory_space<vmem>>, vector<2x64x256xf32>
    %cst = arith.constant 9.99999997E-7 : f32
    %4 = vector.broadcast %cst : f32 to vector<2x64x256xf32>
    %5 = arith.maximumf %3, %4 : vector<2x64x256xf32>
    %6 = arith.mulf %5, %5 : vector<2x64x256xf32>
    %7 = arith.mulf %6, %5 : vector<2x64x256xf32>
    %c0_3 = arith.constant 0 : index
    %c0_4 = arith.constant 0 : index
    %8 = vector.load %arg4[%c0_3, %c0_4] : memref<2x256xf32, #tpu.memory_space<vmem>>, vector<2x256xf32>
    %cst_5 = arith.constant dense<0.000000e+00> : vector<2x256xf32>
    %9 = vector.multi_reduction <add>, %7, %cst_5 [1] : vector<2x64x256xf32> to vector<2x256xf32>
    %10 = arith.addf %8, %9 : vector<2x256xf32>
    %c0_6 = arith.constant 0 : index
    %c0_7 = arith.constant 0 : index
    %11 = vector.load %arg4[%c0_6, %c0_7] : memref<2x256xf32, #tpu.memory_space<vmem>>, vector<2x256xf32>
    tpu.vector_store %arg4[%c0_6, %c0_7], %10 {strides = array<i32>} : memref<2x256xf32, #tpu.memory_space<vmem>>, vector<2x256xf32>,
    %c0_i32_8 = arith.constant 0 : i32
    %12 = arith.cmpi eq, %arg1, %c0_i32_8 : i32
    %13 = arith.extui %12 : i1 to i32
    %c0_i32_9 = arith.constant 0 : i32
    %14 = arith.cmpi ne, %13, %c0_i32_9 : i32
    scf.if %14 {
      %c0_10 = arith.constant 0 : index
      %c0_11 = arith.constant 0 : index
      %15 = vector.load %arg4[%c0_10, %c0_11] : memref<2x256xf32, #tpu.memory_space<vmem>>, vector<2x256xf32>
      %cst_12 = arith.constant 1.562500e-02 : f32
      %16 = vector.broadcast %cst_12 : f32 to vector<2x256xf32>
      %17 = arith.mulf %15, %16 : vector<2x256xf32>
      %18 = math.log %17 : vector<2x256xf32>
      %cst_13 = arith.constant 0.333333343 : f32
      %19 = vector.broadcast %cst_13 : f32 to vector<2x256xf32>
      %20 = arith.mulf %18, %19 : vector<2x256xf32>
      %21 = math.exp %20 : vector<2x256xf32>
      %c0_14 = arith.constant 0 : index
      %c0_15 = arith.constant 0 : index
      %22 = vector.load %arg4[%c0_14, %c0_15] : memref<2x256xf32, #tpu.memory_space<vmem>>, vector<2x256xf32>
      tpu.vector_store %arg4[%c0_14, %c0_15], %21 {strides = array<i32>} : memref<2x256xf32, #tpu.memory_space<vmem>>, vector<2x256xf32>,
    } else {
    }
    return
  }
  func.func @transform_0(%arg0: i32, %arg1: i32) -> (i32, i32) {
    %c0_i32 = arith.constant 0 : i32
    %c0_i32_0 = arith.constant 0 : i32
    %c0_i32_1 = arith.constant 0 : i32
    return %c0_i32, %c0_i32_0 : i32, i32
  }
  func.func @transform_1(%arg0: i32, %arg1: i32) -> (i32, i32, i32) {
    %c0_i32 = arith.constant 0 : i32
    %c0_i32_0 = arith.constant 0 : i32
    return %c0_i32, %arg1, %arg0 : i32, i32, i32
  }
  func.func @transform_2(%arg0: i32, %arg1: i32) -> (i32, i32) {
    %c0_i32 = arith.constant 0 : i32
    %c0_i32_0 = arith.constant 0 : i32
    return %c0_i32, %arg0 : i32, i32
  }
}

</mosaic_0001>

<bundles_post_ra>
// kernel: tpu_custom_call.1
= control target key start
LH: loop header
LB: loop body
LE: loop exit
PB: predicated region body
PF: predicated region fallthrough
CT: control target
= control target key end

     0   :  { %8 = vsyncpa [#allocation4], 0  ;;  %s421_s0 = inlined_call_operand.<no memory space> [shape: f32[1,1], index: 0, kind: input, shape index: {}]   ;;  %s422_s1 = inlined_call_operand.hbm [shape: f32[2,64,256], index: 1, kind: input, shape index: {}]   ;;  %s423_s2 = inlined_call_operand.hbm [shape: f32[2,256], index: 2, kind: output, shape index: {}]  }
   0x1   :  { %9 = vsyncpa [#allocation5], 0  ;;  %s329_s9 = smov [#allocation3]  }
   0x2   :  { %s17_s10 = sshll.u32 %s329_s9, 4  ;;  %s18_s10 = int_to_ptr.vmem [resolvable:$true] %s17_s10 }
   0x3   :  { %s293_s11 = scalar_lea.vmem %s18_s10, 4096  ;;  %p298_p1 = scmp.lt.s32.totalorder %s18_s10, %s18_s10 }
   0x4   :  { %p294_p0 = scmp.ne.s32.totalorder %s18_s10, %s293_s11  ;;  %p299_p2 = scmp.lt.s32.totalorder %s293_s11, %s293_s11 }
   0x6   :  { %p300_p3 = por %p299_p2, %p298_p1 }
   0x8   :  { %p301_p4 = pnand %p300_p3, %p294_p0 }
   0xa   :  { %304 = shalt.err (!%p301_p4)
}
   0xb   :  { %s330_s12 = smov 256   ;;  %s331_s0 = smov 16  }
   0xc   :  { %23 = dma.hbm_to_vmem [thread:$0]  %s422_s1, 4096, %s18_s10, [#allocation4], %s330_s12, %s330_s12, %s331_s0  }
   0xd   :  { %325 = dma.done.wait [#allocation4], 4096  }
   0xe   :  { %326 = vsyncadd [#allocation4], 4294963200  ;;  %v332_v0 = vmov 0.0   ;;  %v32_v1 = vld [vmem:[#allocation3] sm:$0xff]  ;;  %v34_v2 = vld [vmem:[#allocation3 + $0x10] sm:$0xff]  ;;  %vm238_vm0 = vcmask 1041409  }
   0xf   :  { %31 = vst [vmem:[#allocation6] sm:$0xf] %v332_v0  ;;  %v33_v3 = vld [vmem:[#allocation3 + $0x8] sm:$0xff]  ;;  %v35_v4 = vld [vmem:[#allocation3 + $0x18] sm:$0xff]  ;;  %v64_v5 = vmax.f32 %v32_v1, 1e-06 }
  0x10   :  { %v36_v6 = vld [vmem:[#allocation3 + $0x20] sm:$0xff]  ;;  %v66_v7 = vmax.f32 %v34_v2, 1e-06  ;;  %v37_v8 = vld [vmem:[#allocation3 + $0x28] sm:$0xff]  ;;  %v65_v9 = vmax.f32 %v33_v3, 1e-06 }
  0x11   :  { %v67_v10 = vmax.f32 %v35_v4, 1e-06  ;;  %v38_v11 = vld [vmem:[#allocation3 + $0x30] sm:$0xff]  ;;  %v68_v12 = vmax.f32 %v36_v6, 1e-06  ;;  %v96_v13 = vmul.f32 %v64_v5, %v64_v5  ;;  %v39_v15 = vld [vmem:[#allocation3 + $0x38] sm:$0xff] }
  0x12   :  { %v98_v14 = vmul.f32 %v66_v7, %v66_v7  ;;  %v69_v16 = vmax.f32 %v37_v8, 1e-06  ;;  %v40_v17 = vld [vmem:[#allocation3 + $0x40] sm:$0xff]  ;;  %v41_v18 = vld [vmem:[#allocation3 + $0x48] sm:$0xff]  ;;  %v42_v19 = vld [vmem:[#allocation3 + $0x50] sm:$0xff]  ;;  %v97_v21 = vmul.f32 %v65_v9, %v65_v9  ;;  %vm240_vm1 = vcmask 1043459  }
  0x13   :  { %v353_v20 = vmax.f32 %v38_v11, 1e-06  ;;  %v99_v22 = vmul.f32 %v67_v10, %v67_v10  ;;  %v43_v23 = vld [vmem:[#allocation3 + $0x58] sm:$0xff]  ;;  %v44_v24 = vld [vmem:[#allocation3 + $0x60] sm:$0xff]  ;;  %v45_v25 = vld [vmem:[#allocation3 + $0x68] sm:$0xff]  ;;  %v100_v27 = vmul.f32 %v68_v12, %v68_v12  ;;  %v128_v28 = vmul.f32 %v96_v13, %v64_v5  ;;  %s334_s1 = smov [#allocation6]  }
  0x14   :  { %v355_v26 = vmax.f32 %v39_v15, 1e-06  ;;  %v130_v29 = vmul.f32 %v98_v14, %v66_v7  ;;  %v46_v30 = vld [vmem:[#allocation3 + $0x70] sm:$0xff]  ;;  %v47_v31 = vld [vmem:[#allocation3 + $0x78] sm:$0xff]  ;;  %v48_v32 = vld [vmem:[#allocation3 + $0x80] sm:$0xff]  ;;  %v101_v34 = vmul.f32 %v69_v16, %v69_v16  ;;  %v367_v44 = vmul.f32 %v97_v21, %v65_v9  ;;  %s266_s15 = sshll.u32 %s334_s1, 4  ;;  %s267_s15 = int_to_ptr.vmem [resolvable:$true] %s266_s15 }
  0x15   :  { %v357_v33 = vmax.f32 %v40_v17, 1e-06  ;;  %v49_v35 = vld [vmem:[#allocation3 + $0x88] sm:$0xff]  ;;  %v50_v36 = vld [vmem:[#allocation3 + $0x90] sm:$0xff]  ;;  %v51_v37 = vld [vmem:[#allocation3 + $0x98] sm:$0xff]  ;;  %v365_v43 = vmul.f32 %v353_v20, %v353_v20  ;;  %v369_v45 = vmul.f32 %v99_v22, %v67_v10  ;;  %v375_v51 = vmul.f32 %v100_v27, %v68_v12  ;;  %s305_s16 = scalar_lea.vmem %s267_s15, 64  ;;  %p310_p6 = scmp.lt.s32.totalorder %s267_s15, %s267_s15 }
  0x16   :  { %v359_v38 = vmax.f32 %v41_v18, 1e-06  ;;  %v52_v39 = vld [vmem:[#allocation3 + $0xa0] sm:$0xff]  ;;  %v53_v40 = vld [vmem:[#allocation3 + $0xa8] sm:$0xff]  ;;  %v54_v41 = vld [vmem:[#allocation3 + $0xb0] sm:$0xff]  ;;  %v103_v50 = vmul.f32 %v355_v26, %v355_v26  ;;  %v161_v52 = vadd.f32 %v130_v29, %v128_v28  ;;  %v383_v59 = vmul.f32 %v101_v34, %v69_v16  ;;  %p306_p5 = scmp.ne.s32.totalorder %s267_s15, %s305_s16  ;;  %p311_p7 = scmp.lt.s32.totalorder %s305_s16, %s305_s16 }
  0x17   :  { %v361_v42 = vmax.f32 %v42_v19, 1e-06  ;;  %v55_v46 = vld [vmem:[#allocation3 + $0xb8] sm:$0xff]  ;;  %v56_v47 = vld [vmem:[#allocation3 + $0xc0] sm:$0xff]  ;;  %v57_v48 = vld [vmem:[#allocation3 + $0xc8] sm:$0xff]  ;;  %v104_v58 = vmul.f32 %v357_v33, %v357_v33  ;;  %vm242_vm2 = vcmask 1045509  }
  0x18   :  { %v371_v49 = vmax.f32 %v43_v23, 1e-06  ;;  %v58_v53 = vld [vmem:[#allocation3 + $0xd0] sm:$0xff]  ;;  %v59_v54 = vld [vmem:[#allocation3 + $0xd8] sm:$0xff]  ;;  %v60_v55 = vld [vmem:[#allocation3 + $0xe0] sm:$0xff]  ;;  %v105_v63 = vmul.f32 %v359_v38, %v359_v38  ;;  %vm244_vm3 = vcmask 1047559   ;;  %p312_p8 = por %p311_p7, %p310_p6 }
  0x19   :  { %v377_v56 = vmax.f32 %v44_v24, 1e-06  ;;  %v379_v57 = vmax.f32 %v45_v25, 1e-06  ;;  %v385_v60 = vmax.f32 %v46_v30, 1e-06  ;;  %v106_v6 = vmul.f32 %v361_v42, %v361_v42 }
  0x1a   :  { %v387_v61 = vmax.f32 %v47_v31, 1e-06  ;;  %v80_v62 = vmax.f32 %v48_v32, 1e-06  ;;  %v61_v0 = vld [vmem:[#allocation3 + $0xe8] sm:$0xff]  ;;  %v62_v1 = vld [vmem:[#allocation3 + $0xf0] sm:$0xff]  ;;  %v107_v10 = vmul.f32 %v371_v49, %v371_v49  ;;  %p313_p9 = pnand %p312_p8, %p306_p5 }
  0x1b   :  { %427 = vst [vmem:[#allocation9_spill] sm:$0xff] %v379_v57  ;;  %428 = vst [vmem:[#allocation10_spill] sm:$0xff] %v385_v60  ;;  %v63_v2 = vld [vmem:[#allocation3 + $0xf8] sm:$0xff]  ;;  %v81_v3 = vmax.f32 %v49_v35, 1e-06  ;;  %v108_v14 = vmul.f32 %v377_v56, %v377_v56  ;;  %v109_v18 = vmul.f32 %v379_v57, %v379_v57  ;;  %v110_v28 = vmul.f32 %v385_v60, %v385_v60 }
  0x1c   :  { %429 = vst [vmem:[#allocation11_spill] sm:$0xff] %v387_v61  ;;  %v82_v4 = vmax.f32 %v50_v36, 1e-06  ;;  %v83_v5 = vmax.f32 %v51_v37, 1e-06  ;;  %v112_v19 = vmul.f32 %v80_v62, %v80_v62  ;;  %v111_v29 = vmul.f32 %v387_v61, %v387_v61 }
  0x1d   :  { %v84_v7 = vmax.f32 %v52_v39, 1e-06  ;;  %v85_v8 = vmax.f32 %v53_v40, 1e-06  ;;  %v86_v9 = vmax.f32 %v54_v41, 1e-06  ;;  %v113_v21 = vmul.f32 %v81_v3, %v81_v3 }
  0x1e   :  { %v87_v11 = vmax.f32 %v55_v46, 1e-06  ;;  %v88_v12 = vmax.f32 %v56_v47, 1e-06  ;;  %v89_v13 = vmax.f32 %v57_v48, 1e-06  ;;  %v114_v22 = vmul.f32 %v82_v4, %v82_v4 }
  0x1f   :  { %v90_v15 = vmax.f32 %v58_v53, 1e-06  ;;  %v91_v16 = vmax.f32 %v59_v54, 1e-06  ;;  %v92_v17 = vmax.f32 %v60_v55, 1e-06  ;;  %v115_v23 = vmul.f32 %v83_v5, %v83_v5 }
  0x20   :  { %v93_v24 = vmax.f32 %v61_v0, 1e-06  ;;  %v94_v25 = vmax.f32 %v62_v1, 1e-06  ;;  %v95_v27 = vmax.f32 %v63_v2, 1e-06  ;;  %v116_v30 = vmul.f32 %v84_v7, %v84_v7 }
  0x21   :  { %v117_v31 = vmul.f32 %v85_v8, %v85_v8  ;;  %v118_v32 = vmul.f32 %v86_v9, %v86_v9  ;;  %v119_v34 = vmul.f32 %v87_v11, %v87_v11  ;;  %v120_v35 = vmul.f32 %v88_v12, %v88_v12 }
  0x22   :  { %v121_v36 = vmul.f32 %v89_v13, %v89_v13  ;;  %v122_v37 = vmul.f32 %v90_v15, %v90_v15  ;;  %v144_v39 = vmul.f32 %v112_v19, %v80_v62  ;;  %v145_v40 = vmul.f32 %v113_v21, %v81_v3 }
  0x23   :  { %v146_v41 = vmul.f32 %v114_v22, %v82_v4  ;;  %v147_v46 = vmul.f32 %v115_v23, %v83_v5  ;;  %v123_v47 = vmul.f32 %v91_v16, %v91_v16  ;;  %v124_v48 = vmul.f32 %v92_v17, %v92_v17 }
  0x24   :  { %v125_v53 = vmul.f32 %v93_v24, %v93_v24  ;;  %v134_v54 = vmul.f32 %v365_v43, %v353_v20  ;;  %v126_v55 = vmul.f32 %v94_v25, %v94_v25  ;;  %v127_v0 = vmul.f32 %v95_v27, %v95_v27 }
  0x25   :  { %v148_v1 = vmul.f32 %v116_v30, %v84_v7  ;;  %v149_v2 = vmul.f32 %v117_v31, %v85_v8  ;;  %v135_v61 = vmul.f32 %v103_v50, %v355_v26  ;;  %v136_v60 = vmul.f32 %v104_v58, %v357_v33 }
  0x26   :  { %v150_v57 = vmul.f32 %v118_v32, %v86_v9  ;;  %v162_v62 = vadd.f32 %v161_v52, %v375_v51  ;;  %v151_v3 = vmul.f32 %v119_v34, %v87_v11  ;;  %v174_v4 = vadd.f32 %v369_v45, %v367_v44  ;;  %v432_v32 = vld [vmem:[#allocation11_spill] sm:$0xff] }
  0x27   :  { %v187_v5 = vadd.f32 %v146_v41, %v144_v39  ;;  %v200_v19 = vadd.f32 %v147_v46, %v145_v40  ;;  %v137_v21 = vmul.f32 %v105_v63, %v359_v38  ;;  %v138_v20 = vmul.f32 %v106_v6, %v361_v42  ;;  %v430_v38 = vld [vmem:[#allocation9_spill] sm:$0xff]  ;;  %v431_v42 = vld [vmem:[#allocation10_spill] sm:$0xff] }
  0x28   :  { %v152_v43 = vmul.f32 %v120_v35, %v88_v12  ;;  %v163_v7 = vadd.f32 %v162_v62, %v134_v54  ;;  %v153_v8 = vmul.f32 %v121_v36, %v89_v13  ;;  %v175_v26 = vadd.f32 %v174_v4, %v383_v59 }
  0x29   :  { %v188_v50 = vadd.f32 %v187_v5, %v148_v1  ;;  %v201_v33 = vadd.f32 %v200_v19, %v149_v2  ;;  %v139_v58 = vmul.f32 %v107_v10, %v371_v49  ;;  %v140_v51 = vmul.f32 %v108_v14, %v377_v56 }
  0x2a   :  { %v154_v52 = vmul.f32 %v122_v37, %v90_v15  ;;  %v164_v9 = vadd.f32 %v163_v7, %v136_v60  ;;  %v155_v44 = vmul.f32 %v123_v47, %v91_v16  ;;  %v176_v45 = vadd.f32 %v175_v26, %v135_v61 }
  0x2b   :  { %v189_v11 = vadd.f32 %v188_v50, %v150_v57  ;;  %v202_v22 = vadd.f32 %v201_v33, %v151_v3  ;;  %v141_v63 = vmul.f32 %v109_v18, %v430_v38  ;;  %v142_v6 = vmul.f32 %v110_v28, %v431_v42 }
  0x2c   :  { %v156_v12 = vmul.f32 %v124_v48, %v92_v17  ;;  %v165_v13 = vadd.f32 %v164_v9, %v138_v20  ;;  %v157_v23 = vmul.f32 %v125_v53, %v93_v24  ;;  %v177_v59 = vadd.f32 %v176_v45, %v137_v21  ;;  %v160_v45 = vld [vmem:[#allocation6] sm:$0xf] }
  0x2d   :  { %v190_v30 = vadd.f32 %v189_v11, %v152_v43  ;;  %v203_v31 = vadd.f32 %v202_v22, %v153_v8  ;;  %v143_v49 = vmul.f32 %v111_v29, %v432_v32  ;;  %v158_v10 = vmul.f32 %v126_v55, %v94_v25 }
  0x2e   :  { %v166_v56 = vadd.f32 %v165_v13, %v140_v51  ;;  %v159_v14 = vmul.f32 %v127_v0, %v95_v27  ;;  %v178_v60 = vadd.f32 %v177_v59, %v139_v58  ;;  %v221_v29 = vlaneseq }
  0x2f   :  { %v191_v15 = vadd.f32 %v190_v30, %v154_v52  ;;  %v204_v61 = vadd.f32 %v203_v31, %v155_v44  ;;  %v333_v47 = vmov 1983009808  }
  0x30   :  { %v167_v57 = vadd.f32 %v166_v56, %v142_v6  ;;  %v179_v16 = vadd.f32 %v178_v60, %v141_v63  ;;  %v219_v48 = vunpack.c.l.s4 %v333_v47  ;;  %v222_v2 = vshrl.u32 %v221_v29, 7 }
  0x31   :  { %v192_v34 = vadd.f32 %v191_v15, %v156_v12  ;;  %v205_v18 = vadd.f32 %v204_v61, %v157_v23 }
  0x32   :  { %v168_v35 = vrot.slane %v167_v57, 4  ;;  %v180_v28 = vadd.f32 %v179_v16, %v143_v49  ;;  %v220_v5 = vunpack.c.0.s8 %v219_v48 }
  0x33   :  { %v193_v17 = vadd.f32 %v192_v34, %v158_v10  ;;  %v206_v36 = vadd.f32 %v205_v18, %v159_v14 }
  0x34   :  { %v169_v24 = vadd.f32 %v168_v35, %v167_v57  ;;  %v181_v37 = vrot.slane %v180_v28, 4  ;;  %v223_v50 = vsub.s32 %v220_v5, %v222_v2 }
  0x35   :  { %v194_v39 = vrot.slane %v193_v17, 4  ;;  %v207_v40 = vrot.slane %v206_v36, 4 }
  0x36   :  { %v170_v41 = vrot.slane %v169_v24, 2  ;;  %v182_v25 = vadd.f32 %v181_v37, %v180_v28 }
  0x37   :  { %v195_v46 = vadd.f32 %v194_v39, %v193_v17  ;;  %v208_v27 = vadd.f32 %v207_v40, %v206_v36 }
  0x38   :  { %v171_v53 = vadd.f32 %v170_v41, %v169_v24  ;;  %v183_v54 = vrot.slane %v182_v25, 2 }
  0x39   :  { %v196_v55 = vrot.slane %v195_v46, 2  ;;  %v209_v0 = vrot.slane %v208_v27, 2 }
  0x3a   :  { %v172_v1 = vrot.slane %v171_v53, 1  ;;  %v184_v62 = vadd.f32 %v183_v54, %v182_v25 }
  0x3b   :  { %v197_v3 = vadd.f32 %v196_v55, %v195_v46  ;;  %v210_v4 = vadd.f32 %v209_v0, %v208_v27 }
  0x3c   :  { %v173_v19 = vadd.f32 %v172_v1, %v171_v53  ;;  %v185_v21 = vrot.slane %v184_v62, 1 }
  0x3d   :  { %v198_v20 = vrot.slane %v197_v3, 1  ;;  %v211_v43 = vrot.slane %v210_v4, 1 }
  0x3e   :  { %v186_v7 = vadd.f32 %v185_v21, %v184_v62 }
  0x3f   :  { %v199_v8 = vadd.f32 %v198_v20, %v197_v3  ;;  %v212_v26 = vadd.f32 %v211_v43, %v210_v4 }
  0x40   :  { %v217_v33 = vcombine.low %v173_v19, %v186_v7 }
  0x41   :  { %v225_v58 = vcombine.low %v199_v8, %v212_v26 }
  0x42   :  { %v224_v51 = vrot.slane %v217_v33, %v223_v50 }
  0x43   :  { %v232_v52 = vrot.slane %v225_v58, %v223_v50 }
  0x45   :  { %v237_v9 = vrot.slane %v232_v52, 7 }
  0x47   :  { %v239_v44 = vsel %vm238_vm0, %v237_v9, %v224_v51 }
  0x48   :  { %v241_v11 = vsel %vm240_vm1, %v237_v9, %v239_v44 }
  0x49   :  { %v243_v22 = vsel %vm242_vm2, %v237_v9, %v241_v11 }
  0x4a   :  { %v245_v38 = vsel %vm244_vm3, %v237_v9, %v243_v22 }
  0x4b   :  { %v247_v63 = vadd.f32 %v245_v38, %v160_v45 }
  0x4d   :  { %248 = vst [vmem:[#allocation6] sm:$0xf] %v247_v63 }
  0x54   :  { %v252_v42 = vld [vmem:[#allocation6] sm:$0xf] }
  0x55   :  { %v253_v6 = vmul.f32 0.015625, %v252_v42 }
  0x57   :  { %281 = vlog2.f32 %v253_v6 }
  0x64   :  { %v282_v12 = vpop.eup %281 }
  0x65   :  { %v255_v13 = vmul.f32 0.6931472, %v282_v12 }
  0x67   :  { %v256_v23 = vmul.f32 0.33333334, %v255_v13 }
  0x69   :  { %v257_v59 = vmul.f32 1.442695, %v256_v23 }
  0x6b   :  { %283 = vpow2.f32 %v257_v59 }
  0x78   :  { %v284_v30 = vpop.eup %283 }
  0x79   :  { %259 = vst [vmem:[#allocation6] sm:$0xf] %v284_v30 }
  0x7a   :  { %316 = shalt.err (!%p313_p9)
}
  0x7b   :  { %269 = dma.vmem_to_hbm [thread:$0]  %s267_s15, 64, %s423_s2, [#allocation5]  }
  0x7c   :  { %327 = dma.done.wait [#allocation5], 64  }
  0x7d   :  { %328 = vsyncadd [#allocation5], 4294967232 }
  0x7e   :  { %273 = vsyncpa [#allocation4], 1 }
  0x7f   :  { %274 = vsyncpa [#allocation5], 1 }

</bundles_post_ra>
